<compile_context>
chip_gen: v7x
topology: tpu7x:2x2x1
jax: 0.10.0
libtpu: 0.0.40
codegen_flags: <defaults>
</compile_context>

<pallas_src>
import functools
import numpy as np
import jax
import jax.numpy as jnp
from jax.experimental import pallas as pl
from jax.experimental.pallas import tpu as pltpu


# ----------------------------- init-time precompute ---------------------------

def hadamard_matrix(L):
    """Sylvester-ordered Hadamard matrix: H[i,j] = (-1)^popcount(i & j)."""
    idx = jnp.arange(L, dtype=jnp.int32)
    pc = jax.lax.population_count(jnp.bitwise_and(idx[:, None], idx[None, :]))
    return jnp.where(pc % 2 == 0, 1.0, -1.0).astype(jnp.float32)


def fastfood_vars_jax(DD, key):
    """Deterministic analogue of fastfood_vars(DD): (BB, Pi, GG, divisor, LL)."""
    ll = int(np.ceil(np.log2(DD)))
    LL = 2 ** ll
    kb, kp, kg = jax.random.split(key, 3)
    BB = (jax.random.randint(kb, (LL,), 0, 2) * 2 - 1).astype(jnp.float32)   # +/-1
    Pi = jax.random.permutation(kp, LL)                                       # permutation
    GG = jax.random.normal(kg, (LL,), dtype=jnp.float32)                      # gaussian
    divisor = jnp.sqrt(LL * jnp.sum(GG ** 2))
    return (BB, Pi, GG, divisor, LL)


def fastfood_matrix(ff, d, DD):
    """Fold the whole Fastfood transform into one matrix M (d, DD) so that
         fastfood_torched(V, DD, ff) == V @ M      for V of length d (requires d <= LL).
       Row-vector form:  ray = pad(V) @ diag(B) @ H @ Pmat @ diag(G) @ H * scale, take [:DD].
       pad(V) is zero past d, so only the first d rows of the map are ever needed."""
    BB, Pi, GG, divisor, LL = ff
    H = hadamard_matrix(LL)
    Pmat = jnp.eye(LL, dtype=jnp.float32)[Pi].T            # m @ Pmat == m[Pi]  (row-vector gather)
    M = (BB[:, None] * H) @ Pmat                            # diag(B) @ H @ Pmat
    M = (M * GG[None, :]) @ H                               # ... @ diag(G) @ H
    M = M / (divisor * np.sqrt(float(DD) / LL))             # fold the scale in
    return M[:d, :DD]


def build_fused_operands(init_w, init_b, ff_w, ff_b, intrinsic_dim):
    """Everything the fused kernel needs besides x and V, built ONCE at init."""
    out_f, in_f = init_w.shape
    d = intrinsic_dim
    # Fastfood maps for the two wrapped parameters (weight and bias).
    Mw = fastfood_matrix(ff_w, d, out_f * in_f)             # (d, out*in); column o*in+i <-> W[o, i]
    Mb = fastfood_matrix(ff_b, d, out_f)                    # (d, out)
    # Re-layout Mw so that  x @ rayW^T == ((x @ Rx) * (V @ Rv)) @ Mrows :
    #   Mrows[k*in + i, o] = Mw[k, o*in + i]
    Mrows = Mw.reshape(d, out_f, in_f).transpose(0, 2, 1).reshape(d * in_f, out_f)
    # Fixed 0/1 expansion matrices over the "pair" axis c = k*in + i:
    #   (x @ Rx)[b, k*in+i] = x[b, i]      (x tiled d times)
    #   (V @ Rv)[0, k*in+i] = V[k]         (V repeated in_f times)
    Rx = jnp.tile(jnp.eye(in_f, dtype=jnp.float32), (1, d))          # (in,  d*in)
    Rv = jnp.repeat(jnp.eye(d, dtype=jnp.float32), in_f, axis=1)     # (d,   d*in)
    W0T = init_w.T                                                   # (in, out) -> no in-kernel transpose
    b0 = init_b.reshape(1, out_f)                                    # (1, out)
    return (Rx, Rv, Mrows, W0T, b0, Mb)


# ------------------------------ fused Pallas kernel ---------------------------

def fused_fastfood_linear_kernel(x_ref, v_ref, rx_ref, rv_ref, mrows_ref,
                                 w0t_ref, b0_ref, mb_ref, y_ref):
    """y = x @ (W0 + rayW)^T + (b0 + rayB)   where
         x @ rayW^T = ((x @ Rx) * (V @ Rv)) @ Mrows   (precomputed Fastfood map, reassociated)
         rayB       = V @ Mb
       Only rank-2 dots, element-wise multiplies and adds: no transpose/reshape/gather."""
    x = x_ref[...]                                                               # (B, in)
    v = v_ref[...]                                                               # (1, d)
    # theta_0 part of the Linear:  x @ W0^T
    acc = jnp.dot(x, w0t_ref[...], preferred_element_type=jnp.float32)           # (B, out)
    # Fastfood weight ray applied to x:  x @ rayW^T
    xt = jnp.dot(x, rx_ref[...], preferred_element_type=jnp.float32)             # (B, d*in)
    vr = jnp.dot(v, rv_ref[...], preferred_element_type=jnp.float32)             # (1, d*in)
    acc = acc + jnp.dot(xt * vr, mrows_ref[...], preferred_element_type=jnp.float32)
    # Bias: b0 + rayB (broadcast over batch rows)
    acc = acc + b0_ref[...] + jnp.dot(v, mb_ref[...], preferred_element_type=jnp.float32)
    y_ref[...] = acc


@jax.jit
def fastfood_wrapper_forward(x, V, fused_operands):
    """FastfoodWrapper.forward for a wrapped Linear(in, out): ONE fused pallas_call."""
    Rx, Rv, Mrows, W0T, b0, Mb = fused_operands
    batch = x.shape[0]
    out_f = W0T.shape[1]
    v2 = V.reshape(1, -1)
    return pl.pallas_call(
        fused_fastfood_linear_kernel,
        out_shape=jax.ShapeDtypeStruct((batch, out_f), jnp.float32),
        in_specs=[pl.BlockSpec(memory_space=pltpu.MemorySpace.VMEM)] * 8,
        out_specs=pl.BlockSpec(memory_space=pltpu.MemorySpace.VMEM),
    )(x, v2, Rx, Rv, Mrows, W0T, b0, Mb)


# ------------------------------ pure-JAX reference ----------------------------

def fwht_ref(v):
    L = v.shape[0]
    k = int(round(np.log2(L)))
    ret = v.reshape((1,) + (2,) * k + (1,))
    for ii in range(k):
        a, b = jnp.split(ret, 2, axis=ii + 1)
        ret = jnp.concatenate([a + b, a - b], axis=ii + 1)
    return ret.reshape(L)


def fastfood_ref(v, DD, ff):
    BB, Pi, GG, divisor, LL = ff
    vp = jnp.zeros((LL,), jnp.float32).at[:v.shape[0]].set(v)
    m1 = BB * vp
    m2 = fwht_ref(m1)
    m3 = m2[Pi]
    m4 = m3 * GG
    m5 = fwht_ref(m4)
    return m5[:DD] / (divisor * np.sqrt(float(DD) / LL))


# ------------------------------------ main ------------------------------------

if __name__ == "__main__":
    key = jax.random.PRNGKey(0)
    batch, in_f, out_f, intrinsic_dim = 2, 16, 8, 8
    k_x, k_w, k_b, k_v, k_ffw, k_ffb = jax.random.split(key, 6)

    x = jax.random.normal(k_x, (batch, in_f), dtype=jnp.float32)

    # Deterministic "initial" module parameters (theta_0 of the wrapped Linear(16, 8)).
    bound = 1.0 / np.sqrt(in_f)
    init_w = jax.random.uniform(k_w, (out_f, in_f), minval=-bound, maxval=bound, dtype=jnp.float32)
    init_b = jax.random.uniform(k_b, (out_f,), minval=-bound, maxval=bound, dtype=jnp.float32)

    # The PyTorch module initializes V to zeros; use a deterministic non-zero V here
    # so the fastfood path is actually exercised.
    V = jax.random.normal(k_v, (intrinsic_dim,), dtype=jnp.float32)

    ff_w = fastfood_vars_jax(out_f * in_f, k_ffw)   # DD = 128 -> LL = 128
    ff_b = fastfood_vars_jax(out_f, k_ffb)          # DD = 8   -> LL = 8

    # Init-time precompute (FastfoodWrapper.__init__ analogue): fold B/H/Pi/G/H/scale into
    # small matrices once; nothing Fastfood-structural is rebuilt per forward.
    fused_operands = build_fused_operands(init_w, init_b, ff_w, ff_b, intrinsic_dim)

    y = fastfood_wrapper_forward(x, V, fused_operands)
    y = jax.block_until_ready(y)

    # Reference forward (butterfly FWHT + explicit theta reconstruction, plain jnp).
    ray_w_ref = fastfood_ref(V, out_f * in_f, ff_w).reshape(out_f, in_f)
    ray_b_ref = fastfood_ref(V, out_f, ff_b)
    y_ref = x @ (init_w + ray_w_ref).T + (init_b + ray_b_ref)

    np.testing.assert_allclose(np.asarray(y), np.asarray(y_ref), rtol=1e-3, atol=1e-3)
    print("KERNEL_OK")
</pallas_src>

<mosaic_0001>
module attributes {stable_mosaic.version = 11 : i64} {
  func.func @fused_fastfood_linear_kernel(%arg0: memref<2x16xf32, #tpu.memory_space<vmem>>, %arg1: memref<1x8xf32, #tpu.memory_space<vmem>>, %arg2: memref<16x128xf32, #tpu.memory_space<vmem>>, %arg3: memref<8x128xf32, #tpu.memory_space<vmem>>, %arg4: memref<128x8xf32, #tpu.memory_space<vmem>>, %arg5: memref<16x8xf32, #tpu.memory_space<vmem>>, %arg6: memref<1x8xf32, #tpu.memory_space<vmem>>, %arg7: memref<8x8xf32, #tpu.memory_space<vmem>>, %arg8: memref<2x8xf32, #tpu.memory_space<vmem>>) attributes {dimension_semantics = [], scalar_prefetch = 0 : i64, scratch_operands = 0 : i64, tpu.core_type = #tpu.core_type<tc>} {
    %c0 = arith.constant 0 : index
    %c0_0 = arith.constant 0 : index
    %0 = vector.load %arg0[%c0, %c0_0] : memref<2x16xf32, #tpu.memory_space<vmem>>, vector<2x16xf32>
    %c0_1 = arith.constant 0 : index
    %c0_2 = arith.constant 0 : index
    %1 = vector.load %arg1[%c0_1, %c0_2] : memref<1x8xf32, #tpu.memory_space<vmem>>, vector<1x8xf32>
    %c0_3 = arith.constant 0 : index
    %c0_4 = arith.constant 0 : index
    %2 = vector.load %arg5[%c0_3, %c0_4] : memref<16x8xf32, #tpu.memory_space<vmem>>, vector<16x8xf32>
    %cst = arith.constant dense<0.000000e+00> : vector<2x8xf32>
    %3 = tpu.matmul %0, %2, %cst {dimension_numbers = #tpu.dot_dimension_numbers<[1], [0], [0], [1], [0, 0, 1, 1], [], []>} : vector<2x16xf32>, vector<16x8xf32>, vector<2x8xf32> -> vector<2x8xf32>
    %c0_5 = arith.constant 0 : index
    %c0_6 = arith.constant 0 : index
    %4 = vector.load %arg2[%c0_5, %c0_6] : memref<16x128xf32, #tpu.memory_space<vmem>>, vector<16x128xf32>
    %cst_7 = arith.constant dense<0.000000e+00> : vector<2x128xf32>
    %5 = tpu.matmul %0, %4, %cst_7 {dimension_numbers = #tpu.dot_dimension_numbers<[1], [0], [0], [1], [0, 0, 1, 1], [], []>} : vector<2x16xf32>, vector<16x128xf32>, vector<2x128xf32> -> vector<2x128xf32>
    %c0_8 = arith.constant 0 : index
    %c0_9 = arith.constant 0 : index
    %6 = vector.load %arg3[%c0_8, %c0_9] : memref<8x128xf32, #tpu.memory_space<vmem>>, vector<8x128xf32>
    %cst_10 = arith.constant dense<0.000000e+00> : vector<1x128xf32>
    %7 = tpu.matmul %1, %6, %cst_10 {dimension_numbers = #tpu.dot_dimension_numbers<[1], [0], [0], [1], [0, 0, 1, 1], [], []>} : vector<1x8xf32>, vector<8x128xf32>, vector<1x128xf32> -> vector<1x128xf32>
    %8 = vector.broadcast %7 : vector<1x128xf32> to vector<2x128xf32>
    %9 = arith.mulf %5, %8 : vector<2x128xf32>
    %c0_11 = arith.constant 0 : index
    %c0_12 = arith.constant 0 : index
    %10 = vector.load %arg4[%c0_11, %c0_12] : memref<128x8xf32, #tpu.memory_space<vmem>>, vector<128x8xf32>
    %cst_13 = arith.constant dense<0.000000e+00> : vector<2x8xf32>
    %11 = tpu.matmul %9, %10, %cst_13 {dimension_numbers = #tpu.dot_dimension_numbers<[1], [0], [0], [1], [0, 0, 1, 1], [], []>} : vector<2x128xf32>, vector<128x8xf32>, vector<2x8xf32> -> vector<2x8xf32>
    %12 = arith.addf %3, %11 : vector<2x8xf32>
    %c0_14 = arith.constant 0 : index
    %c0_15 = arith.constant 0 : index
    %13 = vector.load %arg6[%c0_14, %c0_15] : memref<1x8xf32, #tpu.memory_space<vmem>>, vector<1x8xf32>
    %14 = vector.broadcast %13 : vector<1x8xf32> to vector<2x8xf32>
    %15 = arith.addf %12, %14 : vector<2x8xf32>
    %c0_16 = arith.constant 0 : index
    %c0_17 = arith.constant 0 : index
    %16 = vector.load %arg7[%c0_16, %c0_17] : memref<8x8xf32, #tpu.memory_space<vmem>>, vector<8x8xf32>
    %cst_18 = arith.constant dense<0.000000e+00> : vector<1x8xf32>
    %17 = tpu.matmul %1, %16, %cst_18 {dimension_numbers = #tpu.dot_dimension_numbers<[1], [0], [0], [1], [0, 0, 1, 1], [], []>} : vector<1x8xf32>, vector<8x8xf32>, vector<1x8xf32> -> vector<1x8xf32>
    %18 = vector.broadcast %17 : vector<1x8xf32> to vector<2x8xf32>
    %19 = arith.addf %15, %18 : vector<2x8xf32>
    %c0_19 = arith.constant 0 : index
    %c0_20 = arith.constant 0 : index
    %20 = vector.load %arg8[%c0_19, %c0_20] : memref<2x8xf32, #tpu.memory_space<vmem>>, vector<2x8xf32>
    tpu.vector_store %arg8[%c0_19, %c0_20], %19 {strides = array<i32>} : memref<2x8xf32, #tpu.memory_space<vmem>>, vector<2x8xf32>,
    return
  }
}

</mosaic_0001>

<bundles_post_ra>
// kernel: fastfood_wrapper_forward.1
= control target key start
LH: loop header
LB: loop body
LE: loop exit
PB: predicated region body
PF: predicated region fallthrough
CT: control target
= control target key end

     0   :  { %v595_v2 = vmov 0.0|0.0   ;;  %vm596_vm0 = vmmov 0   ;;  %v597_v4 = vmov 0.0   ;;  %vm36_vm1 = vcmask 130048   ;;  %s747_s0 = inlined_call_operand.vmem [shape: f32[2,16], index: 0, kind: input, shape index: {}]   ;;  %s748_s1 = inlined_call_operand.vmem [shape: f32[1,8], index: 1, kind: input, shape index: {}]   ;;  %s749_s2 = inlined_call_operand.vmem [shape: f32[16,128], index: 2, kind: input, shape index: {}]   ;;  %s750_s3 = inlined_call_operand.vmem [shape: f32[8,128], index: 3, kind: input, shape index: {}]   ;;  %s751_s4 = inlined_call_operand.vmem [shape: f32[128,8], index: 4, kind: input, shape index: {}]   ;;  %s752_s5 = inlined_call_operand.vmem [shape: f32[16,8], index: 5, kind: input, shape index: {}]   ;;  %s753_s6 = inlined_call_operand.vmem [shape: f32[1,8], index: 6, kind: input, shape index: {}]   ;;  %s754_s7 = inlined_call_operand.vmem [shape: f32[8,8], index: 7, kind: input, shape index: {}]   ;;  %s755_s8 = inlined_call_operand.hbm [shape: f32[2,8], index: 8, kind: output, shape index: {}]  }
   0x1   :  { %v34_v0 = vld [vmem:[%s749_s2] sm:$0xff]  ;;  %v35_v1 = vld [vmem:[%s749_s2 + $0x8] sm:$0xff]  ;;  %537 = vmatprep.subr.bf16.mxu0 %v595_v2  ;;  %482 = vmatprep.mubr.msk.f32.mxu0 %vm596_vm0, %v597_v4  ;;  %v192_v7 = vld [vmem:[%s751_s4 + $0x10] sm:$0xff] }
   0x2   :  { %v538_v3 = vpack.c.bf16 %v35_v1, %v34_v0  ;;  %540 = vmatprep.subr.bf16.mxu1 %v595_v2  ;;  %v190_v5 = vld [vmem:[%s751_s4] sm:$0xff]  ;;  %v191_v6 = vld [vmem:[%s751_s4 + $0x8] sm:$0xff]  ;;  %522 = vmatprep.mubr.msk.f32.mxu1 %vm596_vm0, %v597_v4  ;;  %v193_v10 = vld [vmem:[%s751_s4 + $0x18] sm:$0xff] }
   0x3   :  { %v30_v8 = vld [vmem:[%s747_s0] sm:$0x3]  ;;  %v541_v9 = vpack.c.bf16 %v191_v6, %v190_v5  ;;  %v544_v12 = vpack.c.bf16 %v193_v10, %v192_v7  ;;  %v195_v14 = vld [vmem:[%s751_s4 + $0x28] sm:$0xff] }
   0x4   :  { %539 = vmatpush3.bf16.msra.mxu0 %v538_v3  ;;  %v110_v11 = vld [vmem:[%s750_s3] sm:$0xff] }
   0x5   :  { %485 = vmatprep.subr.mxu0 %v597_v4  ;;  %542 = vmatpush3.bf16.msra.mxu1 %v541_v9  ;;  %v194_v13 = vld [vmem:[%s751_s4 + $0x20] sm:$0xff] }
   0x6   :  { %543 = vmatprep.subr.bf16.mxu1 %v595_v2 }
   0x7   :  { %483 = vmatmul.mubr.msk.f32.vlgmr.msra.gmra.mrb[0].mxu0 %vm36_vm1, %v30_v8 }
   0x8   :  { %13 = vsyncpa [#allocation3], 0  ;;  %486 = vmatpush3.msra.mxu0 %v110_v11  ;;  %487 = vmatprep.mubr.msk.f32.mxu0 %vm596_vm0, %v597_v4  ;;  %v31_v15 = vld [vmem:[%s748_s1] sm:$0x1]  ;;  %vm111_vm2 = vcmask 64512   ;;  %v547_v16 = vpack.c.bf16 %v195_v14, %v194_v13  ;;  %v196_v17 = vld [vmem:[%s751_s4 + $0x30] sm:$0xff]  ;;  %v185_v36 = vlaneseq }
   0x9   :  { %564 = vmatprep.subr.bf16.mxu0 %v595_v2  ;;  %545 = vmatpush3.bf16.msra.mxu1 %v544_v12  ;;  %v197_v18 = vld [vmem:[%s751_s4 + $0x38] sm:$0xff]  ;;  %v198_v20 = vld [vmem:[%s751_s4 + $0x40] sm:$0xff]  ;;  %v199_v21 = vld [vmem:[%s751_s4 + $0x48] sm:$0xff]  ;;  %s598_s3 = smov [#allocation2]   ;;  %vm430_vm3 = vcmask 58368  }
   0xa   :  { %546 = vmatprep.subr.bf16.mxu1 %v595_v2  ;;  %v550_v19 = vpack.c.bf16 %v197_v18, %v196_v17  ;;  %v553_v22 = vpack.c.bf16 %v199_v21, %v198_v20  ;;  %v200_v23 = vld [vmem:[%s751_s4 + $0x50] sm:$0xff]  ;;  %v201_v24 = vld [vmem:[%s751_s4 + $0x58] sm:$0xff]  ;;  %v202_v26 = vld [vmem:[%s751_s4 + $0x60] sm:$0xff]  ;;  %v186_v37 = vshrl.u32 %v185_v36, 7  ;;  %s438_s24 = sshll.u32 %s598_s3, 4  ;;  %s439_s24 = int_to_ptr.vmem [resolvable:$true] %s438_s24 }
   0xb   :  { %488 = vmatmul.mubr.msk.f32.vlgmr.msra.gmra.mrb[2].mxu0 %vm111_vm2, %v31_v15  ;;  %v556_v25 = vpack.c.bf16 %v201_v24, %v200_v23  ;;  %v203_v27 = vld [vmem:[%s751_s4 + $0x68] sm:$0xff]  ;;  %v32_v29 = vld [vmem:[%s752_s5] sm:$0xff]  ;;  %v204_v32 = vld [vmem:[%s751_s4 + $0x70] sm:$0xff]  ;;  %s571_s25 = scalar_lea.vmem %s439_s24, 32  ;;  %p576_p1 = scmp.lt.s32.totalorder %s439_s24, %s439_s24 }
   0xc   :  { %529 = vmatprep.mubr.msk.f32.mxu0 %vm596_vm0, %v597_v4  ;;  %v559_v28 = vpack.c.bf16 %v203_v27, %v202_v26  ;;  %v33_v30 = vld [vmem:[%s752_s5 + $0x8] sm:$0xff]  ;;  %v205_v33 = vld [vmem:[%s751_s4 + $0x78] sm:$0xff]  ;;  %v354_v35 = vld [vmem:[%s754_s7] sm:$0xff]  ;;  %v187_v40 = vsub.s32 0, %v186_v37  ;;  %p572_p0 = scmp.ne.s32.totalorder %s439_s24, %s571_s25  ;;  %p577_p2 = scmp.lt.s32.totalorder %s571_s25, %s571_s25 }
   0xd   :  { %548 = vmatpush3.bf16.msra.mxu1 %v547_v16  ;;  %v565_v31 = vpack.c.bf16 %v33_v30, %v32_v29  ;;  %v562_v34 = vpack.c.bf16 %v205_v33, %v204_v32  ;;  %v449_v50 = vld [vmem:[%s753_s6] ss:$0 sm:$0xff] }
   0xe   :  { %549 = vmatprep.subr.bf16.mxu1 %v595_v2  ;;  %p578_p3 = por %p577_p2, %p576_p1 }
   0xf   :  { %566 = vmatpush3.bf16.msra.mxu0 %v565_v31 }
  0x10   :  { %532 = vmatprep.subr.mxu0 %v597_v4  ;;  %p579_p4 = pnand %p578_p3, %p572_p0 }
  0x11   :  { %551 = vmatpush3.bf16.msra.mxu1 %v550_v19 }
  0x12   :  { %552 = vmatprep.subr.bf16.mxu1 %v595_v2  ;;  %530 = vmatmul.mubr.msk.f32.vlgmr.msra.gmra.mrb[4].mxu0 %vm36_vm1, %v30_v8 }
  0x13   :  { %534 = vmatprep.mubr.msk.f32.mxu0 %vm596_vm0, %v597_v4  ;;  %533 = vmatpush3.msra.mxu0 %v354_v35 }
  0x15   :  { %554 = vmatpush3.bf16.msra.mxu1 %v553_v22 }
  0x16   :  { %555 = vmatprep.subr.bf16.mxu1 %v595_v2  ;;  %535 = vmatmul.mubr.msk.f32.vlgmr.msra.gmra.mrb[6].mxu0 %vm111_vm2, %v31_v15 }
  0x19   :  { %557 = vmatpush3.bf16.msra.mxu1 %v556_v25 }
  0x1a   :  { %558 = vmatprep.subr.bf16.mxu1 %v595_v2 }
  0x1d   :  { %560 = vmatpush3.bf16.msra.mxu1 %v559_v28 }
  0x1e   :  { %561 = vmatprep.subr.bf16.mxu1 %v595_v2 }
  0x21   :  { %563 = vmatpush3.bf16.msra.mxu1 %v562_v34 }
  0xda   :  { %v106_v38 = vpop.f32.mrb[0].mxu0 }
  0xdb   :  { %v484_v39 = vpop.f32.mrb[1].mxu0 }
  0xde   :  { %v181_v41 = vpop.f32.mrb[2].mxu0 }
  0xdf   :  { %v188_v42 = vrot.slane %v181_v41, %v187_v40  ;;  %v489_v43 = vpop.f32.mrb[3].mxu0 }
  0xe1   :  { %v189_v44 = vmul.f32 %v188_v42, %v106_v38 }
  0xe3   :  { %523 = vmatmul.mubr.f32.vlgmr.msra.gmra.mrb[0].mxu1 %v189_v44 }
  0xe5   :  { %v342_v45 = vpop.f32.mrb[4].mxu0 }
  0xe6   :  { %v531_v46 = vpop.f32.mrb[5].mxu0 }
  0xe9   :  { %v421_v47 = vpop.f32.mrb[6].mxu0 }
  0xea   :  { %v536_v48 = vpop.f32.mrb[7].mxu0  ;;  %v428_v53 = vrot.slane %v421_v47, %v187_v40 }
 0x1b6   :  { %v272_v49 = vpop.f32.mrb[0].mxu1 }
 0x1b7   :  { %v343_v51 = vadd.f32 %v342_v45, %v272_v49  ;;  %v524_v52 = vpop.f32.mrb[1].mxu1 }
 0x1b9   :  { %v353_v54 = vadd.f32 %v449_v50, %v343_v51 }
 0x1bb   :  { %v429_v55 = vadd.f32 %v428_v53, %v353_v54 }
 0x1bd   :  { %431 = vst.msk [vmem:[#allocation2] sm:$0x3] %vm430_vm3, %v429_v55 }
 0x1be   :  { %582 = shalt.err (!%p579_p4)
}
 0x1bf   :  { %s583_s6 = scalar_lea.hbm %s755_s8, 32 }
 0x1c0   :  { %p584_p5 = scmp.ne.s32.totalorder %s755_s8, %s583_s6  ;;  %p587_p6 = scmp.lt.u32.totalorder %s583_s6, %s755_s8 }
 0x1c2   :  { %p589_p7 = pnand %p587_p6, %p584_p5 }
 0x1c4   :  { %592 = shalt.err (!%p589_p7)
}
 0x1c5   :  { %441 = dma.vmem_to_hbm [thread:$0]  %s439_s24, 32, %s755_s8, [#allocation3]  }
 0x1c6   :  { %593 = dma.done.wait [#allocation3], 32  }
 0x1c7   :  { %594 = vsyncadd [#allocation3], 4294967264 }
 0x1c8   :  { %445 = vsyncpa [#allocation3], 1 }

</bundles_post_ra>
